<compile_context>
chip_gen: v5e
topology: v5e:2x2
jax: 0.10.0
libtpu: 0.0.40
codegen_flags: <defaults>
</compile_context>

<pallas_src>
import functools

import numpy as np
import jax
import jax.numpy as jnp
from jax import lax
from jax.experimental import pallas as pl
from jax.experimental.pallas import tpu as pltpu

_EPS = 1e-5


def _round_up(x, m):
    return ((x + m - 1) // m) * m


def _vmem_budget_bytes():
    # ~80% of physical VMEM per core (64 MiB on v7x, 128 MiB on v5e/v6e).
    try:
        cap = int(pltpu.get_tpu_info().vmem_capacity_bytes)
    except Exception:
        cap = 64 * 1024 * 1024          # conservative fallback (v7x size)
    return int(cap * 0.8)


# ---------------------------------------------------------------------------
# Kernels
# ---------------------------------------------------------------------------

def _affine_matmul_stats_kernel(x_ref, sc_ref, sh_ref, w_ref,
                                y_ref, s_ref, sq_ref):
    """y = (x*scale + shift) @ w  (folded-BN affine on the input, bf16 MXU
    operands, f32 accumulation) + per-tile partial stats of the bf16 output."""
    xn = (x_ref[...].astype(jnp.float32) * sc_ref[...] + sh_ref[...]
          ).astype(jnp.bfloat16)
    y = jnp.dot(xn, w_ref[...], preferred_element_type=jnp.float32)
    yb = y.astype(jnp.bfloat16)
    y_ref[...] = yb
    yf = yb.astype(jnp.float32)
    s_ref[0] = jnp.sum(yf, axis=0, keepdims=True)
    sq_ref[0] = jnp.sum(yf * yf, axis=0, keepdims=True)


def _conv3x3_stats_kernel(y1_ref, sc_ref, sh_ref, w2_ref,
                          y_ref, s_ref, sq_ref, pad_ref, col_ref,
                          *, H, W, TB, S, PAD_TOP):
    """BN1 (folded affine) + 3x3 conv (stride 1, padding 1) via a single
    im2col matmul with K = 9*C, + per-tile partial BN2 stats."""
    HW = H * W
    C = y1_ref.shape[1]
    GAP = S - HW

    # Folded BN on the previous conv's output, cast to bf16 for the MXU.
    yn = (y1_ref[...].astype(jnp.float32) * sc_ref[...] + sh_ref[...]
          ).astype(jnp.bfloat16)

    # Stage into a row-padded buffer: >= W+1 zero rows before the first image
    # and in each per-image slot's tail gap, so dy = +/-1 taps never read a
    # neighboring image (zero rows == the conv's zero padding). Only the border
    # / gap rows are zeroed; image interiors are fully overwritten.
    pad_ref[0:PAD_TOP, :] = jnp.zeros((PAD_TOP, C), jnp.bfloat16)
    gap_zeros = jnp.zeros((GAP, C), jnp.bfloat16)
    for b in range(TB):
        base = PAD_TOP + b * S
        pad_ref[base:base + HW, :] = yn[b * HW:(b + 1) * HW, :]
        pad_ref[base + HW:base + S, :] = gap_zeros

    # (HW, 1) w-boundary masks; only the 6 dx != 0 taps need masking.
    w_idx = lax.broadcasted_iota(jnp.int32, (HW, 1), 0) % W
    left_ok = w_idx > 0         # dx = -1 valid
    right_ok = w_idx < W - 1    # dx = +1 valid

    # im2col: 9 shifted (dx-masked) copies -> (M_t, 9*C) bf16, then ONE MXU
    # matmul with K = 9*C against w2 laid out wrapper-side as (9*C, C).
    taps = [(dy, dx) for dy in (-1, 0, 1) for dx in (-1, 0, 1)]
    for k, (dy, dx) in enumerate(taps):
        off = dy * W + dx
        for b in range(TB):
            base = PAD_TOP + b * S + off
            src = pad_ref[base:base + HW, :]      # static slice, bf16
            if dx == -1:
                src = jnp.where(left_ok, src, 0)
            elif dx == 1:
                src = jnp.where(right_ok, src, 0)
            col_ref[b * HW:(b + 1) * HW, k * C:(k + 1) * C] = src

    y = jnp.dot(col_ref[...], w2_ref[...], preferred_element_type=jnp.float32)
    yb = y.astype(jnp.bfloat16)
    y_ref[...] = yb
    yf = yb.astype(jnp.float32)
    s_ref[0] = jnp.sum(yf, axis=0, keepdims=True)
    sq_ref[0] = jnp.sum(yf * yf, axis=0, keepdims=True)


def _bn_relu_residual_kernel(y3_ref, sc_ref, sh_ref, x_ref, o_ref):
    """BN3 (folded affine) + ReLU (end of 'bottle') + identity shortcut + ReLU."""
    left = jnp.maximum(
        y3_ref[...].astype(jnp.float32) * sc_ref[...] + sh_ref[...], 0.0)
    o_ref[...] = jnp.maximum(left + x_ref[...], 0.0)


# ---------------------------------------------------------------------------
# Wrapper
# ---------------------------------------------------------------------------

def _stats_to_affine(sums, sumsqs, gamma, beta, m_total):
    """Reduce per-tile partial stats and fold BN into y*scale + shift."""
    inv_m = jnp.float32(1.0 / m_total)
    mean = jnp.sum(sums, axis=(0, 1)) * inv_m               # (C,)
    var = jnp.sum(sumsqs, axis=(0, 1)) * inv_m - mean * mean  # biased variance
    scale = gamma.reshape(-1) * lax.rsqrt(var + _EPS)
    shift = beta.reshape(-1) - mean * scale
    return scale.reshape(1, -1), shift.reshape(1, -1)


def _pick_tile_batch(N, H, W, C, budget):
    """Largest divisor TB of N whose pass-2 VMEM footprint fits the budget."""
    HW = H * W
    S = _round_up(HW + W + 1, 16)
    PAD_TOP = _round_up(W + 1, 16)
    for tb in range(N, 0, -1):
        if N % tb:
            continue
        mt = tb * HW
        if N // tb > 1 and mt % 8 != 0:
            continue                      # tile row count must be sublane-aligned
        est = (2 * mt * C * 2             # input tile (bf16), double-buffered
               + 2 * mt * C * 2           # output tile (bf16), double-buffered
               + 9 * C * C * 2            # w2 (bf16), VMEM-resident
               + (PAD_TOP + tb * S) * C * 2   # padded staging scratch
               + mt * 9 * C * 2           # im2col scratch
               + mt * C * 4)              # f32 temporaries (normalized tile)
        if int(est * 1.25) <= budget:
            return tb
    return 1


def bottleneck_forward(x_nchw, params, *, tile_batch=None):
    """x_nchw: (N, C, H, W) float32.  Returns (N, C, H, W) float32."""
    (w1, g1, b1, w2, g2, b2, w3, g3, b3) = params
    N, C, H, W = x_nchw.shape
    HW = H * W
    M = N * HW

    # Identity-shortcut configuration only (inchannel == outchannel, stride 1),
    # matching the reference module's `self.bottle`.
    assert w1.shape == (C, C) and w3.shape == (C, C) and w2.shape == (9, C, C), \
        "strided / channel-changing Bottleneck variant is not implemented"
    assert C % 128 == 0, "channel count must be lane-dense (multiple of 128)"

    budget = _vmem_budget_bytes()
    TB = tile_batch if tile_batch is not None else _pick_tile_batch(N, H, W, C, budget)
    assert N % TB == 0
    num_tiles = N // TB
    MT = TB * HW
    assert num_tiles == 1 or MT % 8 == 0

    S = _round_up(HW + W + 1, 16)        # per-image row stride in pad scratch
    PAD_TOP = _round_up(W + 1, 16)       # zero rows before the first image

    # glue: NCHW -> NHWC -> (M, C), channels on the lane (fast) dim.
    x2d = jnp.transpose(x_nchw, (0, 2, 3, 1)).reshape(M, C).astype(jnp.float32)

    # MXU operands in bf16 (accumulation stays f32 inside the kernels).
    w1b = w1.astype(jnp.bfloat16)
    w2b = w2.reshape(9 * C, C).astype(jnp.bfloat16)   # im2col weight layout
    w3b = w3.astype(jnp.bfloat16)

    ones = jnp.ones((1, C), jnp.float32)
    zeros = jnp.zeros((1, C), jnp.float32)

    act_spec = pl.BlockSpec((MT, C), lambda i: (i, 0))
    const_vec = pl.BlockSpec((1, C), lambda i: (0, 0))      # VMEM-resident
    stats_spec = pl.BlockSpec((1, 1, C), lambda i: (i, 0, 0))
    stats_shape = jax.ShapeDtypeStruct((num_tiles, 1, C), jnp.float32)
    cparams = pltpu.CompilerParams(
        dimension_semantics=("parallel",),      # tiles independent -> megacore OK
        vmem_limit_bytes=budget)

    def matmul_pass(inp, scale, shift, w):
        return pl.pallas_call(
            _affine_matmul_stats_kernel,
            grid=(num_tiles,),
            in_specs=[act_spec, const_vec, const_vec,
                      pl.BlockSpec((C, C), lambda i: (0, 0))],
            out_specs=(act_spec, stats_spec, stats_spec),
            out_shape=(jax.ShapeDtypeStruct((M, C), jnp.bfloat16),
                       stats_shape, stats_shape),
            compiler_params=cparams,
            cost_estimate=pl.CostEstimate(
                flops=2 * M * C * C, transcendentals=0,
                bytes_accessed=M * C * (inp.dtype.itemsize + 2) + C * C * 2),
        )(inp, scale, shift, w)

    def conv3x3_pass(y1, scale, shift):
        kernel = functools.partial(_conv3x3_stats_kernel, H=H, W=W, TB=TB,
                                   S=S, PAD_TOP=PAD_TOP)
        return pl.pallas_call(
            kernel,
            grid=(num_tiles,),
            in_specs=[act_spec, const_vec, const_vec,
                      pl.BlockSpec((9 * C, C), lambda i: (0, 0))],
            out_specs=(act_spec, stats_spec, stats_spec),
            out_shape=(jax.ShapeDtypeStruct((M, C), jnp.bfloat16),
                       stats_shape, stats_shape),
            scratch_shapes=[
                pltpu.VMEM((PAD_TOP + TB * S, C), jnp.bfloat16),  # padded rows
                pltpu.VMEM((MT, 9 * C), jnp.bfloat16),            # im2col buffer
            ],
            compiler_params=cparams,
            cost_estimate=pl.CostEstimate(
                flops=2 * M * 9 * C * C, transcendentals=0,
                bytes_accessed=2 * M * C * 2 + 9 * C * C * 2),
        )(y1, scale, shift, w2b)

    def residual_pass(y3, scale, shift):
        return pl.pallas_call(
            _bn_relu_residual_kernel,
            grid=(num_tiles,),
            in_specs=[act_spec, const_vec, const_vec, act_spec],
            out_specs=act_spec,
            out_shape=jax.ShapeDtypeStruct((M, C), jnp.float32),
            compiler_params=cparams,
            cost_estimate=pl.CostEstimate(
                flops=4 * M * C, transcendentals=0,
                bytes_accessed=10 * M * C),
        )(y3, scale, shift, x2d)

    # Pass 1: conv1x1 + partial BN1 stats (input affine is identity).
    y1, s1, q1 = matmul_pass(x2d, ones, zeros, w1b)
    sc1, sh1 = _stats_to_affine(s1, q1, g1, b1, M)

    # Pass 2: BN1 (folded) + 3x3 conv (single K=9C im2col matmul) + BN2 stats.
    y2, s2, q2 = conv3x3_pass(y1, sc1, sh1)
    sc2, sh2 = _stats_to_affine(s2, q2, g2, b2, M)

    # Pass 3: BN2 (folded) + conv1x1 + BN3 stats.
    y3, s3, q3 = matmul_pass(y2, sc2, sh2, w3b)
    sc3, sh3 = _stats_to_affine(s3, q3, g3, b3, M)

    # Pass 4: BN3 (folded) + ReLU + identity shortcut + ReLU.
    out2d = residual_pass(y3, sc3, sh3)

    return out2d.reshape(N, H, W, C).transpose(0, 3, 1, 2)


# ---------------------------------------------------------------------------
# Plain-JAX reference (mirrors the kernel's precision: bf16 conv operands,
# f32 accumulation, bf16-rounded intermediates, f32 training-mode BatchNorm).
# ---------------------------------------------------------------------------

def _reference_nchw(x_nchw, params):
    (w1, g1, b1, w2, g2, b2, w3, g3, b3) = params
    x = jnp.transpose(x_nchw, (0, 2, 3, 1)).astype(jnp.float32)  # NHWC
    C = x.shape[-1]
    dn = ('NHWC', 'HWIO', 'NHWC')

    def conv(inp, w_hwio):
        y = lax.conv_general_dilated(
            inp.astype(jnp.bfloat16), w_hwio.astype(jnp.bfloat16),
            (1, 1), 'SAME', dimension_numbers=dn,
            preferred_element_type=jnp.float32)
        return y.astype(jnp.bfloat16)       # kernel stores intermediates in bf16

    def bn(yb, g, b):
        yf = yb.astype(jnp.float32)
        mean = yf.mean(axis=(0, 1, 2), keepdims=True)
        var = (yf * yf).mean(axis=(0, 1, 2), keepdims=True) - mean * mean
        scale = g.reshape(1, 1, 1, C) * lax.rsqrt(var + _EPS)
        shift = b.reshape(1, 1, 1, C) - mean * scale
        return yf * scale + shift

    y = bn(conv(x, w1[None, None]), g1, b1)
    y = bn(conv(y, w2.reshape(3, 3, C, C)), g2, b2)
    y = bn(conv(y, w3[None, None]), g3, b3)
    left = jnp.maximum(y, 0.0)
    out = jnp.maximum(left + x, 0.0)
    return jnp.transpose(out, (0, 3, 1, 2))


if __name__ == "__main__":
    # Lane-dense channel count (C multiple of 128); inchannel == outchannel,
    # stride == 1 (identity shortcut) as the reference module requires.
    N, C, H, W = 4, 128, 8, 8
    key = jax.random.PRNGKey(0)
    ks = jax.random.split(key, 10)

    x = jax.random.normal(ks[0], (N, C, H, W), jnp.float32)

    # Conv weights in matmul layout: (Cin, Cout); 3x3 weights as (9, Cin, Cout)
    # with tap index k = (ky * 3 + kx)  (== HWIO reshaped).
    w1 = 0.1 * jax.random.normal(ks[1], (C, C), jnp.float32)
    w2 = 0.1 * jax.random.normal(ks[2], (9, C, C), jnp.float32)
    w3 = 0.1 * jax.random.normal(ks[3], (C, C), jnp.float32)

    # BatchNorm affine parameters.
    g1 = 1.0 + 0.1 * jax.random.normal(ks[4], (1, C), jnp.float32)
    b1 = 0.1 * jax.random.normal(ks[5], (1, C), jnp.float32)
    g2 = 1.0 + 0.1 * jax.random.normal(ks[6], (1, C), jnp.float32)
    b2 = 0.1 * jax.random.normal(ks[7], (1, C), jnp.float32)
    g3 = 1.0 + 0.1 * jax.random.normal(ks[8], (1, C), jnp.float32)
    b3 = 0.1 * jax.random.normal(ks[9], (1, C), jnp.float32)

    params = (w1, g1, b1, w2, g2, b2, w3, g3, b3)

    # tile_batch=2 -> 2 grid tiles, exercising the tiled grid and the
    # cross-tile BatchNorm stats reduction (auto-pick would use one big tile
    # at this toy size).
    out = bottleneck_forward(x, params, tile_batch=2)
    out = jax.block_until_ready(out)

    ref = _reference_nchw(x, params)
    np.testing.assert_allclose(np.asarray(out), np.asarray(ref),
                               rtol=1e-2, atol=1e-2)

    print("KERNEL_OK")
</pallas_src>

<mosaic_0001>
module attributes {stable_mosaic.version = 11 : i64} {
  func.func @_affine_matmul_stats_kernel(%arg0: i32, %arg1: memref<128x128xf32, #tpu.memory_space<vmem>>, %arg2: memref<1x128xf32, #tpu.memory_space<vmem>>, %arg3: memref<1x128xf32, #tpu.memory_space<vmem>>, %arg4: memref<128x128xbf16, #tpu.memory_space<vmem>>, %arg5: memref<128x128xbf16, #tpu.memory_space<vmem>>, %arg6: memref<1x1x128xf32, #tpu.memory_space<vmem>>, %arg7: memref<1x1x128xf32, #tpu.memory_space<vmem>>) attributes {dimension_semantics = [#tpu.dimension_semantics<parallel>], iteration_bounds = array<i64: 2>, scalar_prefetch = 0 : i64, scratch_operands = 0 : i64, tpu.core_type = #tpu.core_type<tc>, window_params = [{transform_indices = @transform_0, window_bounds = array<i64: 128, 128>}, {pipeline_mode = #tpu.pipeline_mode<synchronous>, transform_indices = @transform_1, window_bounds = array<i64: 1, 128>}, {pipeline_mode = #tpu.pipeline_mode<synchronous>, transform_indices = @transform_2, window_bounds = array<i64: 1, 128>}, {pipeline_mode = #tpu.pipeline_mode<synchronous>, transform_indices = @transform_3, window_bounds = array<i64: 128, 128>}, {transform_indices = @transform_4, window_bounds = array<i64: 128, 128>}, {transform_indices = @transform_5, window_bounds = array<i64: 1, 1, 128>}, {transform_indices = @transform_6, window_bounds = array<i64: 1, 1, 128>}]} {
    %c0 = arith.constant 0 : index
    %c0_0 = arith.constant 0 : index
    %0 = vector.load %arg1[%c0, %c0_0] : memref<128x128xf32, #tpu.memory_space<vmem>>, vector<128x128xf32>
    %c0_1 = arith.constant 0 : index
    %c0_2 = arith.constant 0 : index
    %1 = vector.load %arg2[%c0_1, %c0_2] : memref<1x128xf32, #tpu.memory_space<vmem>>, vector<1x128xf32>
    %2 = vector.broadcast %1 : vector<1x128xf32> to vector<128x128xf32>
    %3 = arith.mulf %0, %2 : vector<128x128xf32>
    %c0_3 = arith.constant 0 : index
    %c0_4 = arith.constant 0 : index
    %4 = vector.load %arg3[%c0_3, %c0_4] : memref<1x128xf32, #tpu.memory_space<vmem>>, vector<1x128xf32>
    %5 = vector.broadcast %4 : vector<1x128xf32> to vector<128x128xf32>
    %6 = arith.addf %3, %5 : vector<128x128xf32>
    %7 = arith.truncf %6 : vector<128x128xf32> to vector<128x128xbf16>
    %c0_5 = arith.constant 0 : index
    %c0_6 = arith.constant 0 : index
    %8 = vector.load %arg4[%c0_5, %c0_6] : memref<128x128xbf16, #tpu.memory_space<vmem>>, vector<128x128xbf16>
    %cst = arith.constant dense<0.000000e+00> : vector<128x128xf32>
    %9 = tpu.matmul %7, %8, %cst {dimension_numbers = #tpu.dot_dimension_numbers<[1], [0], [0], [1], [0, 0, 1, 1], [], []>} : vector<128x128xbf16>, vector<128x128xbf16>, vector<128x128xf32> -> vector<128x128xf32>
    %10 = arith.truncf %9 : vector<128x128xf32> to vector<128x128xbf16>
    %c0_7 = arith.constant 0 : index
    %c0_8 = arith.constant 0 : index
    %11 = vector.load %arg5[%c0_7, %c0_8] : memref<128x128xbf16, #tpu.memory_space<vmem>>, vector<128x128xbf16>
    tpu.vector_store %arg5[%c0_7, %c0_8], %10 {strides = array<i32>} : memref<128x128xbf16, #tpu.memory_space<vmem>>, vector<128x128xbf16>,
    %12 = arith.extf %10 : vector<128x128xbf16> to vector<128x128xf32>
    %cst_9 = arith.constant dense<0.000000e+00> : vector<128xf32>
    %13 = vector.multi_reduction <add>, %12, %cst_9 [0] : vector<128x128xf32> to vector<128xf32>
    %14 = vector.shape_cast %13 : vector<128xf32> to vector<1x128xf32>
    %c0_10 = arith.constant 0 : index
    %c0_11 = arith.constant 0 : index
    %c0_12 = arith.constant 0 : index
    %15 = vector.load %arg6[%c0_10, %c0_11, %c0_12] : memref<1x1x128xf32, #tpu.memory_space<vmem>>, vector<1x1x128xf32>
    %16 = vector.shape_cast %15 : vector<1x1x128xf32> to vector<1x128xf32>
    %17 = vector.shape_cast %14 : vector<1x128xf32> to vector<1x1x128xf32>
    tpu.vector_store %arg6[%c0_10, %c0_11, %c0_12], %17 {strides = array<i32>} : memref<1x1x128xf32, #tpu.memory_space<vmem>>, vector<1x1x128xf32>,
    %18 = arith.mulf %12, %12 : vector<128x128xf32>
    %cst_13 = arith.constant dense<0.000000e+00> : vector<128xf32>
    %19 = vector.multi_reduction <add>, %18, %cst_13 [0] : vector<128x128xf32> to vector<128xf32>
    %20 = vector.shape_cast %19 : vector<128xf32> to vector<1x128xf32>
    %c0_14 = arith.constant 0 : index
    %c0_15 = arith.constant 0 : index
    %c0_16 = arith.constant 0 : index
    %21 = vector.load %arg7[%c0_14, %c0_15, %c0_16] : memref<1x1x128xf32, #tpu.memory_space<vmem>>, vector<1x1x128xf32>
    %22 = vector.shape_cast %21 : vector<1x1x128xf32> to vector<1x128xf32>
    %23 = vector.shape_cast %20 : vector<1x128xf32> to vector<1x1x128xf32>
    tpu.vector_store %arg7[%c0_14, %c0_15, %c0_16], %23 {strides = array<i32>} : memref<1x1x128xf32, #tpu.memory_space<vmem>>, vector<1x1x128xf32>,
    return
  }
  func.func @transform_0(%arg0: i32) -> (i32, i32) {
    %c0_i32 = arith.constant 0 : i32
    %c0_i32_0 = arith.constant 0 : i32
    return %arg0, %c0_i32 : i32, i32
  }
  func.func @transform_1(%arg0: i32) -> (i32, i32) {
    %c0_i32 = arith.constant 0 : i32
    %c0_i32_0 = arith.constant 0 : i32
    %c0_i32_1 = arith.constant 0 : i32
    return %c0_i32, %c0_i32_0 : i32, i32
  }
  func.func @transform_2(%arg0: i32) -> (i32, i32) {
    %c0_i32 = arith.constant 0 : i32
    %c0_i32_0 = arith.constant 0 : i32
    %c0_i32_1 = arith.constant 0 : i32
    return %c0_i32, %c0_i32_0 : i32, i32
  }
  func.func @transform_3(%arg0: i32) -> (i32, i32) {
    %c0_i32 = arith.constant 0 : i32
    %c0_i32_0 = arith.constant 0 : i32
    %c0_i32_1 = arith.constant 0 : i32
    return %c0_i32, %c0_i32_0 : i32, i32
  }
  func.func @transform_4(%arg0: i32) -> (i32, i32) {
    %c0_i32 = arith.constant 0 : i32
    %c0_i32_0 = arith.constant 0 : i32
    return %arg0, %c0_i32 : i32, i32
  }
  func.func @transform_5(%arg0: i32) -> (i32, i32, i32) {
    %c0_i32 = arith.constant 0 : i32
    %c0_i32_0 = arith.constant 0 : i32
    %c0_i32_1 = arith.constant 0 : i32
    return %arg0, %c0_i32, %c0_i32_0 : i32, i32, i32
  }
  func.func @transform_6(%arg0: i32) -> (i32, i32, i32) {
    %c0_i32 = arith.constant 0 : i32
    %c0_i32_0 = arith.constant 0 : i32
    %c0_i32_1 = arith.constant 0 : i32
    return %arg0, %c0_i32, %c0_i32_0 : i32, i32, i32
  }
}

</mosaic_0001>

<bundles_post_ra>
// kernel: tpu_custom_call.1
= control target key start
LH: loop header
LB: loop body
LE: loop exit
PB: predicated region body
PF: predicated region fallthrough
CT: control target
= control target key end

     0   :  { %s1569_s0 = inlined_call_operand.hbm [shape: f32[256,128], index: 0, kind: input, shape index: {}]   ;;  %s1570_s1 = inlined_call_operand.hbm [shape: f32[1,128], index: 1, kind: input, shape index: {}]   ;;  %s1571_s2 = inlined_call_operand.vmem [shape: f32[1,128], index: 2, kind: input, shape index: {}]   ;;  %s1572_s3 = inlined_call_operand.hbm [shape: bf16[128,128], index: 3, kind: input, shape index: {}]   ;;  %s1573_s4 = inlined_call_operand.hbm [shape: bf16[256,128], index: 4, kind: output, shape index: {0}]   ;;  %s1574_s5 = inlined_call_operand.hbm [shape: f32[2,1,128], index: 5, kind: output, shape index: {1}]   ;;  %s1575_s6 = inlined_call_operand.hbm [shape: f32[2,1,128], index: 6, kind: output, shape index: {2}]  }
   0x1   :  { %1579 = sst [smem:[#allocation18_spill]] %s1570_s1 }
   0x2   :  { %1580 = sst [smem:[#allocation19_spill]] %s1572_s3 }
   0x3   :  { %12 = vsyncpa [#allocation3], 0 }
   0x4   :  { %14 = vsyncpa [#allocation3 + $0x1], 0 }
   0x5   :  { %15 = vsyncpa [#allocation6], 0 }
   0x6   :  { %16 = vsyncpa [#allocation4], 0 }
   0x7   :  { %18 = vsyncpa [#allocation4 + $0x1], 0 }
   0x8   :  { %19 = vsyncpa [#allocation10], 0 }
   0x9   :  { %21 = vsyncpa [#allocation10 + $0x1], 0  ;;  %s1282_s21 = smov 0   ;;  %s1284_s22 = smov 0  }
   0xa   :  { %s1286_s23 = smov 0   ;;  %s1288_s24 = smov 0  }
   0xb LB: > { %s1303_s25 = sadd.s32 4294967295, %s1237_s24   ;;  %s1576_s26 = sadd.s32 4294967294, %s1237_s24   ;;  %s1237_s24 = sphi %s1288_s24, %s1593_s24   ;;  %s1233_s23 = sphi %s1286_s23, %s1597_s23   ;;  %s1229_s22 = sphi %s1284_s22, %s1596_s22   ;;  %s1225_s21 = sphi %s1282_s21, %s1595_s21  }
   0xc   : > { %s1307_s27 = sadd.s32 1, %s1237_s24   ;;  %s34_s28 = sadd.s32 1, %s1233_s23 }
   0xd   : > { %1581 = sst [smem:[#allocation16_spill]] %s1307_s27  ;;  %s31_s29 = ssub.s32 %s1237_s24, %s1307_s27 }
   0xe   : > { %p41_p0 = scmp.ne.s32.totalorder %s1233_s23, %s1229_s22  ;;  %p32_p1 = scmp.eq.s32.totalorder %s31_s29, 0 }
   0xf   : > { %p42_p2 = scmp.eq.s32.totalorder %s1237_s24, 0  ;;  %p47_p3 = scmp.ne.s32.totalorder %s1229_s22, %s1225_s21 }
  0x10   : > { %p48_p4 = scmp.eq.s32.totalorder %s1303_s25, 0  ;;  %p134_p7 = scmp.eq.s32.totalorder %s1303_s25, 1 }
  0x11   : > { %s1319_s30 = scalar_select %p32_p1, %s1233_s23, %s34_s28  }
  0x12   : > { %p1321_p5 = por %p42_p2, %p41_p0  ;;  %p1327_p6 = por %p48_p4, %p47_p3 }
  0x13   : > { %1582 = sst [smem:[#allocation17_spill]] %s1319_s30  ;;  %p140_p8 = scmp.eq.s32.totalorder %s1576_s26, 1 }
  0x14   : > { %p802_p9 = scmp.ge.s32.totalorder %s1237_s24, 1  ;;  %p199_p10 = scmp.lt.s32.totalorder %s1237_s24, 3 }
  0x15   : > { %p1336_p11 = por %p134_p7, %p41_p0  ;;  %p1340_p12 = por %p140_p8, %p47_p3 }
  0x16   : > { %p1344_p13 = pnand %p802_p9, %p199_p10  ;;  %s1588_s1 = sld [smem:[#allocation18_spill]] }
  0x17   : > { %s1239_s15 = smov [#allocation5]   ;;  %p971_p3 = scmp.lt.s32.totalorder %s1237_s24, 2 }
  0x18   : > { %p948_p1 = pneg %p1344_p13  ;;  %s213_s16 = sshll.u32 %s1239_s15, 4  ;;  %s214_s16 = int_to_ptr.vmem [resolvable:$true] %s213_s16 }
  0x19   : > { %s1589_s3 = sld [smem:[#allocation19_spill]]  ;;  %p1362_p7 = pnand %p971_p3, %p1321_p5 }
  0x1a   : > { %p949_p2 = pnand %p948_p1, %p48_p4  ;;  %s1240_s28 = smov [#allocation7]  }
  0x1b   : > { %s227_s29 = sshll.u32 %s1240_s28, 4  ;;  %s241_s12 = sand.u32 1, %s1233_s23   ;;  %s228_s29 = int_to_ptr.vmem [resolvable:$true] %s227_s29 }
  0x1c   : > { %s211_s14 = sshll.u32 %s1588_s1, 4  ;;  %s1241_s13 = smov 64   ;;  %s212_s14 = int_to_ptr.hbm [resolvable:$true] %s211_s14 }
  0x1d   : > { %951 = dma.hbm_to_vmem [thread:$0]  (!%p949_p2), %s212_s14, 16, %s214_s16, [#allocation6]  }
  0x1e   : > { %s1242_s15 = smov 4   ;;  %s806_s26 = sshll.u32 %s241_s12, 7 }
  0x1f   : > { %s225_s19 = sshll.u32 %s1589_s3, 4  ;;  %s851_s1 = sshll.u32 %s1237_s24, 7  ;;  %s226_s19 = int_to_ptr.hbm [resolvable:$true] %s225_s19 }
  0x20   : > { %954 = dma.hbm_to_vmem [thread:$0]  (!%p949_p2), %s226_s19, 1024, %s228_s29, [#allocation6], %s1241_s13, %s1241_s13, %s1242_s15  }
  0x21   : > { %s250_s18 = scalar_lea.hbm %s1569_s0, %s851_s1  ;;  %s245_s14 = scalar_lea.vmem [#allocation2], %s806_s26 }
  0x22   : > { %s253_s7 = sshll.u32 %s245_s14, 4  ;;  %s251_s16 = sshll.u32 %s250_s18, 4  ;;  %s254_s7 = int_to_ptr.vmem [resolvable:$true] %s253_s7  ;;  %s252_s16 = int_to_ptr.hbm [resolvable:$true] %s251_s16 }
  0x23   : > { %s242_s3 = scalar_lea.sflag [#allocation3], %s241_s12  ;;  %s1077_s27 = sshra.s32 %s252_s16, 4  ;;  %s1078_s27 = int_to_ptr.hbm [resolvable:$true] %s1077_s27 }
  0x24   : > { %s1079_s28 = scalar_lea.hbm %s1078_s27, 128  ;;  %p1081_p8 = pneg %p1362_p7 }
  0x25   : > { %p1080_p5 = scmp.ne.s32.totalorder %s1078_s27, %s1079_s28  ;;  %s1084_s13 = scalar_lea.hbm %s1569_s0, 256 }
  0x26   : > { %p1085_p1 = scmp.lt.s32.totalorder %s1078_s27, %s1569_s0  ;;  %p1086_p2 = scmp.lt.s32.totalorder %s1084_s13, %s1079_s28 }
  0x27   : > { %p1082_p9 = pnand %p1081_p8, %p1080_p5 }
  0x28   : > { %p1087_p3 = por %p1086_p2, %p1085_p1 }
  0x29   : > { %p1083_p10 = pneg %p1082_p9 }
  0x2b   : > { %p1088_p0 = pnand %p1087_p3, %p1083_p10 }
  0x2d   : > { %1091 = shalt.err (!%p1088_p0)
}
  0x2e   : > { %s1243_s26 = smov 128   ;;  %s1244_s12 = smov 8  }
  0x2f   : > { %958 = dma.hbm_to_vmem [thread:$0]  (!%p1362_p7), %s252_s16, 2048, %s254_s7, %s242_s3, %s1243_s26, %s1243_s26, %s1244_s12  }
  0x30   : > { %265 = sbr.rel (%p1344_p13) target bundleno = 295 (0x127), region = 36  ;;  %s1384_s15 = sand.u32 (!%p1344_p13), 1, %s1229_s22  }
  0x31   : > { %s810_s17 = sshll.u32 (!%p1344_p13), %s1384_s15, 7  ;;  %s268_s27 = scalar_lea.sflag (!%p1344_p13), [#allocation3], %s1384_s15 }
  0x32   : > { %s1388_s18 = scalar_lea.vmem (!%p1344_p13), [#allocation2], %s810_s17 }
  0x35   : > { %1208 = dma.done.wait (%p1327_p6), %s268_s27, 2048  }
  0x36   : > { %1210 = vsyncadd (%p1327_p6), %s268_s27, 4294965248 }
  0x37   : > { %1212 = dma.done.wait (%p48_p4), [#allocation6], 1040  }
  0x38   : > { %1214 = vsyncadd (%p48_p4), [#allocation6], 4294966256  ;;  %v859_v0 = vld [vmem:[#allocation7 + $0x38] sm:$0xff]  ;;  %v858_v1 = vld [vmem:[#allocation7 + $0x30] sm:$0xff]  ;;  %s813_s11 = sshll.u32 %s1384_s15, 6  ;;  %s860_s14 = sshll.u32 %s1303_s25, 6 }
  0x39   : > { %449 = vmatpush.bf16.msra.mxu0 %v859_v0  ;;  %908 = vmatpush.bf16.msra.mxu1 %v859_v0  ;;  %v857_v2 = vld [vmem:[#allocation7 + $0x28] sm:$0xff]  ;;  %v856_v3 = vld [vmem:[#allocation7 + $0x20] sm:$0xff]  ;;  %v855_v4 = vld [vmem:[#allocation7 + $0x18] sm:$0xff]  ;;  %s1440_s20 = scalar_lea.vmem [#allocation8], %s813_s11  ;;  %s626_s28 = scalar_lea.hbm %s1573_s4, %s860_s14 }
  0x3a   : > { %909 = vmatpush.bf16.msra.mxu2 %v859_v0  ;;  %910 = vmatpush.bf16.msra.mxu3 %v859_v0  ;;  %v1398_v5 = vld [vmem:[#allocation5] ss:$0 sm:$0xff]  ;;  %v854_v6 = vld [vmem:[#allocation7 + $0x10] sm:$0xff]  ;;  %v322_v8 = vld [vmem:[%s1388_s18 + $0x8] sm:$0xff]  ;;  %s627_s19 = sshll.u32 %s1440_s20, 4  ;;  %s629_s29 = sshll.u32 %s626_s28, 4  ;;  %s1467_s19 = int_to_ptr.vmem [resolvable:$true] %s627_s19  ;;  %s630_s29 = int_to_ptr.hbm [resolvable:$true] %s629_s29 }
  0x3b   : > { %v321_v7 = vld [vmem:[%s1388_s18] sm:$0xff]  ;;  %v326_v10 = vld [vmem:[%s1388_s18 + $0x28] sm:$0xff]  ;;  %v342_v17 = vmul.f32 %v1398_v5, %v322_v8  ;;  %v323_v38 = vld [vmem:[%s1388_s18 + $0x10] sm:$0xff]  ;;  %s607_s13 = scalar_lea.sflag [#allocation4], %s1384_s15  ;;  %s1121_s30 = sshra.s32 %s630_s29, 4  ;;  %s1122_s30 = int_to_ptr.hbm [resolvable:$true] %s1121_s30 }
  0x3c   : > { %v325_v9 = vld [vmem:[%s1388_s18 + $0x20] sm:$0xff]  ;;  %v330_v12 = vld [vmem:[%s1388_s18 + $0x48] sm:$0xff]  ;;  %v341_v15 = vmul.f32 %v1398_v5, %v321_v7  ;;  %v346_v19 = vmul.f32 %v1398_v5, %v326_v10  ;;  %v324_v39 = vld [vmem:[%s1388_s18 + $0x18] sm:$0xff]  ;;  %v343_v46 = vmul.f32 %v1398_v5, %v323_v38  ;;  %s1123_s1 = scalar_lea.hbm %s1122_s30, 64  ;;  %s1127_s17 = scalar_lea.hbm %s1573_s4, 128 }
  0x3d   : > { %450 = vmatpush.bf16.msra.mxu0 %v858_v1  ;;  %911 = vmatpush.bf16.msra.mxu1 %v858_v1  ;;  %v329_v11 = vld [vmem:[%s1388_s18 + $0x40] sm:$0xff]  ;;  %v334_v14 = vld [vmem:[%s1388_s18 + $0x68] sm:$0xff]  ;;  %v345_v18 = vmul.f32 %v1398_v5, %v325_v9  ;;  %v350_v22 = vmul.f32 %v1398_v5, %v330_v12  ;;  %v327_v40 = vld [vmem:[%s1388_s18 + $0x30] sm:$0xff]  ;;  %v344_v47 = vmul.f32 %v1398_v5, %v324_v39  ;;  %p1124_p4 = scmp.ne.s32.totalorder %s1122_s30, %s1123_s1  ;;  %p1128_p0 = scmp.lt.s32.totalorder %s1122_s30, %s1573_s4 }
  0x3e   : > { %912 = vmatpush.bf16.msra.mxu2 %v858_v1  ;;  %913 = vmatpush.bf16.msra.mxu3 %v858_v1  ;;  %v333_v13 = vld [vmem:[%s1388_s18 + $0x60] sm:$0xff]  ;;  %v349_v20 = vmul.f32 %v1398_v5, %v329_v11  ;;  %v853_v21 = vld [vmem:[#allocation7 + $0x8] sm:$0xff]  ;;  %v354_v24 = vmul.f32 %v1398_v5, %v334_v14  ;;  %v328_v41 = vld [vmem:[%s1388_s18 + $0x38] sm:$0xff]  ;;  %v347_v48 = vmul.f32 %v1398_v5, %v327_v40  ;;  %p1129_p7 = scmp.lt.s32.totalorder %s1127_s17, %s1123_s1 }
  0x3f   : > { %v1016_v16 = vld [vmem:[%s1571_s2] ss:$0 sm:$0xff]  ;;  %v353_v23 = vmul.f32 %v1398_v5, %v333_v13  ;;  %v852_v30 = vld [vmem:[#allocation7] sm:$0xff]  ;;  %v331_v42 = vld [vmem:[%s1388_s18 + $0x50] sm:$0xff]  ;;  %v348_v49 = vmul.f32 %v1398_v5, %v328_v41  ;;  %p1125_p6 = pnand %p1124_p4, %p1336_p11 }
  0x40   : > { %v361_v25 = vadd.f32 %v1016_v16, %v341_v15  ;;  %v362_v26 = vadd.f32 %v1016_v16, %v342_v17  ;;  %v365_v27 = vadd.f32 %v1016_v16, %v345_v18  ;;  %v366_v28 = vadd.f32 %v1016_v16, %v346_v19  ;;  %v332_v43 = vld [vmem:[%s1388_s18 + $0x58] sm:$0xff]  ;;  %v335_v44 = vld [vmem:[%s1388_s18 + $0x70] sm:$0xff]  ;;  %p1130_p5 = por %p1129_p7, %p1128_p0 }
  0x41   : > { %451 = vmatpush.bf16.msra.mxu0 %v857_v2  ;;  %914 = vmatpush.bf16.msra.mxu1 %v857_v2  ;;  %v369_v29 = vadd.f32 %v1016_v16, %v349_v20  ;;  %v370_v31 = vadd.f32 %v1016_v16, %v350_v22  ;;  %v373_v32 = vadd.f32 %v1016_v16, %v353_v23  ;;  %v336_v45 = vld [vmem:[%s1388_s18 + $0x78] sm:$0xff]  ;;  %p1126_p13 = pneg %p1125_p6 }
  0x42   : > { %915 = vmatpush.bf16.msra.mxu2 %v857_v2  ;;  %916 = vmatpush.bf16.msra.mxu3 %v857_v2  ;;  %v374_v33 = vadd.f32 %v1016_v16, %v354_v24  ;;  %v377_v34 = vpack.c.bf16 %v362_v26, %v361_v25  ;;  %v379_v35 = vpack.c.bf16 %v366_v28, %v365_v27 }
  0x43   : > { %v381_v36 = vpack.c.bf16 %v370_v31, %v369_v29  ;;  %v351_v50 = vmul.f32 %v1398_v5, %v331_v42  ;;  %v352_v51 = vmul.f32 %v1398_v5, %v332_v43  ;;  %v355_v52 = vmul.f32 %v1398_v5, %v335_v44  ;;  %p1131_p8 = pnand %p1130_p5, %p1126_p13 }
  0x44   : > { %v383_v37 = vpack.c.bf16 %v374_v33, %v373_v32  ;;  %v356_v53 = vmul.f32 %v1398_v5, %v336_v45  ;;  %v363_v54 = vadd.f32 %v1016_v16, %v343_v46  ;;  %v364_v55 = vadd.f32 %v1016_v16, %v344_v47 }
  0x45   : > { %452 = vmatpush.bf16.msra.mxu0 %v856_v3  ;;  %917 = vmatpush.bf16.msra.mxu1 %v856_v3  ;;  %v367_v56 = vadd.f32 %v1016_v16, %v347_v48  ;;  %v368_v57 = vadd.f32 %v1016_v16, %v348_v49  ;;  %v371_v58 = vadd.f32 %v1016_v16, %v351_v50 }
  0x46   : > { %918 = vmatpush.bf16.msra.mxu2 %v856_v3  ;;  %919 = vmatpush.bf16.msra.mxu3 %v856_v3  ;;  %v372_v59 = vadd.f32 %v1016_v16, %v352_v51  ;;  %v375_v60 = vadd.f32 %v1016_v16, %v355_v52  ;;  %v376_v61 = vadd.f32 %v1016_v16, %v356_v53 }
  0x47   : > { %v378_v62 = vpack.c.bf16 %v364_v55, %v363_v54  ;;  %v380_v63 = vpack.c.bf16 %v368_v57, %v367_v56 }
  0x48   : > { %v382_v0 = vpack.c.bf16 %v372_v59, %v371_v58  ;;  %v384_v1 = vpack.c.bf16 %v376_v61, %v375_v60 }
  0x49   : > { %453 = vmatpush.bf16.msra.mxu0 %v855_v4  ;;  %920 = vmatpush.bf16.msra.mxu1 %v855_v4 }
  0x4a   : > { %921 = vmatpush.bf16.msra.mxu2 %v855_v4  ;;  %922 = vmatpush.bf16.msra.mxu3 %v855_v4 }
  0x4d   : > { %454 = vmatpush.bf16.msra.mxu0 %v854_v6  ;;  %923 = vmatpush.bf16.msra.mxu1 %v854_v6 }
  0x4e   : > { %924 = vmatpush.bf16.msra.mxu2 %v854_v6  ;;  %925 = vmatpush.bf16.msra.mxu3 %v854_v6 }
  0x51   : > { %455 = vmatpush.bf16.msra.mxu0 %v853_v21  ;;  %926 = vmatpush.bf16.msra.mxu1 %v853_v21 }
  0x52   : > { %927 = vmatpush.bf16.msra.mxu2 %v853_v21  ;;  %928 = vmatpush.bf16.msra.mxu3 %v853_v21 }
  0x55   : > { %456 = vmatpush.bf16.msra.mxu0 %v852_v30  ;;  %929 = vmatpush.bf16.msra.mxu1 %v852_v30 }
  0x56   : > { %930 = vmatpush.bf16.msra.mxu2 %v852_v30  ;;  %931 = vmatpush.bf16.msra.mxu3 %v852_v30 }
  0x58   : > { %457 = vmatmul.bf16.vlgmr.msra.gmra.mxu0 %v377_v34  ;;  %467 = vmatmul.bf16.vlgmr.msra.gmra.mxu1 %v379_v35 }
  0x59   : > { %477 = vmatmul.bf16.vlgmr.msra.gmra.mxu2 %v381_v36  ;;  %487 = vmatmul.bf16.vlgmr.msra.gmra.mxu3 %v383_v37 }
  0x68   : > { %462 = vmatmul.bf16.gmra.mxu0 %v378_v62  ;;  %472 = vmatmul.bf16.gmra.mxu1 %v380_v63 }
  0x69   : > { %482 = vmatmul.bf16.gmra.mxu2 %v382_v0  ;;  %492 = vmatmul.bf16.gmra.mxu3 %v384_v1 }
  0xd5   : > { %v458_v2 = vpop.f32.mrf.mxu0  ;;  %v468_v3 = vpop.f32.mrf.mxu1 }
  0xd6   : > { %v498_v13 = vpack.c.bf16 %v458_v2, %v458_v2  ;;  %v502_v22 = vpack.c.bf16 %v468_v3, %v468_v3 }
  0xd8   : > { %v530_v20 = vunpack.c.l.bf16 %v498_v13  ;;  %v534_v35 = vunpack.c.l.bf16 %v502_v22 }
  0xda   : > { %v568_v26 = vmul.f32 %v530_v20, %v530_v20  ;;  %v572_v46 = vmul.f32 %v534_v35, %v534_v35 }
  0xdc   : > { %v1436_v4 = vpop.f32.mrf.mxu2  ;;  %v1438_v5 = vpop.f32.mrf.mxu3 }
  0xdd   : > { %v460_v6 = vpop.f32.mrf.mxu0  ;;  %v470_v7 = vpop.f32.mrf.mxu1  ;;  %v506_v45 = vpack.c.bf16 %v1436_v4, %v1436_v4 }
  0xde   : > { %v864_v8 = vpack.c.bf16 %v460_v6, %v458_v2  ;;  %v874_v9 = vpack.c.bf16 %v470_v7, %v468_v3  ;;  %v499_v10 = vpack.c.bf16 %v460_v6, %v460_v6  ;;  %v503_v28 = vpack.c.bf16 %v470_v7, %v470_v7 }
  0xdf   : > { %v538_v59 = vunpack.c.l.bf16 %v506_v45 }
  0xe0   : > { %865 = vst [vmem:[%s1440_s20] sm:$0xff] %v864_v8   ;;  %v531_v19 = vunpack.c.l.bf16 %v499_v10  ;;  %v535_v40 = vunpack.c.l.bf16 %v503_v28 }
  0xe1   : > { %902 = vst [vmem:[%s1440_s20 + $0x10] sm:$0xff] %v874_v9  }
  0xe2   : > { %v569_v23 = vmul.f32 %v531_v19, %v531_v19  ;;  %v546_v27 = vadd.f32 %v531_v19, %v530_v20  ;;  %v573_v55 = vmul.f32 %v535_v40, %v535_v40 }
  0xe4   : > { %v1444_v11 = vpop.f32.mrf.mxu2  ;;  %v1446_v12 = vpop.f32.mrf.mxu3  ;;  %v584_v36 = vadd.f32 %v569_v23, %v568_v26 }
  0xe5   : > { %v463_v14 = vpop.f32.mrf.mxu0  ;;  %v473_v15 = vpop.f32.mrf.mxu1  ;;  %v884_v16 = vpack.c.bf16 %v1444_v11, %v1436_v4  ;;  %v894_v17 = vpack.c.bf16 %v1446_v12, %v1438_v5  ;;  %v507_v52 = vpack.c.bf16 %v1444_v11, %v1444_v11 }
  0xe6   : > { %v500_v18 = vpack.c.bf16 %v463_v14, %v463_v14  ;;  %v504_v38 = vpack.c.bf16 %v473_v15, %v473_v15 }
  0xe7   : > { %904 = vst [vmem:[%s1440_s20 + $0x20] sm:$0xff] %v884_v16   ;;  %v539_v0 = vunpack.c.l.bf16 %v507_v52 }
  0xe8   : > { %906 = vst [vmem:[%s1440_s20 + $0x30] sm:$0xff] %v894_v17   ;;  %v532_v21 = vunpack.c.l.bf16 %v500_v18  ;;  %v536_v47 = vunpack.c.l.bf16 %v504_v38 }
  0xea   : > { %v570_v31 = vmul.f32 %v532_v21, %v532_v21  ;;  %v547_v37 = vadd.f32 %v546_v27, %v532_v21  ;;  %v574_v60 = vmul.f32 %v536_v47, %v536_v47 }
  0xec   : > { %v1454_v24 = vpop.f32.mrf.mxu2  ;;  %v1456_v25 = vpop.f32.mrf.mxu3  ;;  %v585_v41 = vadd.f32 %v584_v36, %v570_v31 }
  0xed   : > { %v465_v29 = vpop.f32.mrf.mxu0  ;;  %v475_v30 = vpop.f32.mrf.mxu1  ;;  %v508_v63 = vpack.c.bf16 %v1454_v24, %v1454_v24 }
  0xee   : > { %v501_v32 = vpack.c.bf16 %v465_v29, %v465_v29  ;;  %v869_v33 = vpack.c.bf16 %v465_v29, %v463_v14  ;;  %v879_v34 = vpack.c.bf16 %v475_v30, %v473_v15  ;;  %v505_v44 = vpack.c.bf16 %v475_v30, %v475_v30 }
  0xf0   : > { %901 = vst [vmem:[%s1440_s20 + $0x8] sm:$0xff] %v869_v33   ;;  %v533_v39 = vunpack.c.l.bf16 %v501_v32  ;;  %v537_v57 = vunpack.c.l.bf16 %v505_v44 }
  0xf1   : > { %903 = vst [vmem:[%s1440_s20 + $0x18] sm:$0xff] %v879_v34  }
  0xf2   : > { %v548_v42 = vadd.f32 %v547_v37, %v533_v39  ;;  %v571_v43 = vmul.f32 %v533_v39, %v533_v39 }
  0xf4   : > { %v549_v48 = vadd.f32 %v548_v42, %v534_v35  ;;  %v586_v49 = vadd.f32 %v585_v41, %v571_v43  ;;  %v485_v50 = vpop.f32.mrf.mxu2  ;;  %v1469_v51 = vpop.f32.mrf.mxu3 }
  0xf5   : > { %v889_v53 = vpack.c.bf16 %v485_v50, %v1454_v24  ;;  %v899_v54 = vpack.c.bf16 %v1469_v51, %v1456_v25 }
  0xf6   : > { %v587_v56 = vadd.f32 %v586_v49, %v572_v46  ;;  %v550_v58 = vadd.f32 %v549_v48, %v535_v40 }
  0xf7   : > { %905 = vst [vmem:[%s1440_s20 + $0x28] sm:$0xff] %v889_v53  }
  0xf8   : > { %v551_v61 = vadd.f32 %v550_v58, %v536_v47  ;;  %v588_v62 = vadd.f32 %v587_v56, %v573_v55  ;;  %907 = vst [vmem:[%s1440_s20 + $0x38] sm:$0xff] %v899_v54  }
  0xf9   : > { %1134 = shalt.err (!%p1131_p8)
}
  0xfa   : > { %s1245_s3 = smov 64   ;;  %s1246_s8 = smov 4   ;;  %v552_v1 = vadd.f32 %v551_v61, %v537_v57  ;;  %v575_v2 = vmul.f32 %v537_v57, %v537_v57  ;;  %v589_v3 = vadd.f32 %v588_v62, %v574_v60  ;;  %v509_v4 = vpack.c.bf16 %v485_v50, %v485_v50 }
  0xfb   : > { %942 = dma.vmem_to_hbm [thread:$0]  (%p1336_p11), %s1467_s19, 1024, %s630_s29, %s607_s13, %s1245_s3, %s1245_s3, %s1246_s8   ;;  %v510_v6 = vpack.c.bf16 %v1438_v5, %v1438_v5  ;;  %v576_v7 = vmul.f32 %v538_v59, %v538_v59  ;;  %v540_v10 = vunpack.c.l.bf16 %v508_v63  ;;  %v511_v11 = vpack.c.bf16 %v1446_v12, %v1446_v12 }
  0xfc   : > { %v553_v8 = vadd.f32 %v552_v1, %v538_v59  ;;  %v590_v9 = vadd.f32 %v589_v3, %v575_v2  ;;  %v577_v13 = vmul.f32 %v539_v0, %v539_v0  ;;  %v541_v16 = vunpack.c.l.bf16 %v509_v4  ;;  %s641_s14 = scalar_lea.hbm %s1574_s5, %s1303_s25  ;;  %s611_s7 = sand.u32 1, %s1303_s25  }
  0xfd   : > { %v542_v17 = vunpack.c.l.bf16 %v510_v6  ;;  %v578_v19 = vmul.f32 %v540_v10, %v540_v10  ;;  %v512_v21 = vpack.c.bf16 %v1456_v25, %v1456_v25  ;;  %v543_v22 = vunpack.c.l.bf16 %v511_v11  ;;  %s654_s19 = scalar_lea.hbm %s1575_s6, %s1303_s25  ;;  %s312_s29 = scalar_lea.vmem [#allocation9], %s1384_s15 }
  0xfe   : > { %v591_v14 = vadd.f32 %v590_v9, %v576_v7  ;;  %v554_v15 = vadd.f32 %v553_v8, %v539_v0  ;;  %v579_v24 = vmul.f32 %v541_v16, %v541_v16  ;;  %v513_v26 = vpack.c.bf16 %v1469_v51, %v1469_v51  ;;  %s1510_s13 = sshll.u32 %s312_s29, 4  ;;  %s1512_s30 = sshll.u32 %s641_s14, 4  ;;  %s644_s13 = int_to_ptr.vmem [resolvable:$true] %s1510_s13  ;;  %s646_s30 = int_to_ptr.hbm [resolvable:$true] %s1512_s30 }
  0xff   : > { %v580_v27 = vmul.f32 %v542_v17, %v542_v17  ;;  %v544_v29 = vunpack.c.l.bf16 %v512_v21  ;;  %v581_v30 = vmul.f32 %v543_v22, %v543_v22  ;;  %s318_s1 = scalar_lea.vmem [#allocation11], %s1384_s15  ;;  %s1517_s12 = sshll.u32 %s654_s19, 4  ;;  %s659_s12 = int_to_ptr.hbm [resolvable:$true] %s1517_s12 }
 0x100   : > { %v555_v18 = vadd.f32 %v554_v15, %v540_v10  ;;  %v592_v20 = vadd.f32 %v591_v14, %v577_v13  ;;  %v545_v33 = vunpack.c.l.bf16 %v513_v26  ;;  %s1515_s26 = sshll.u32 %s318_s1, 4  ;;  %s612_s25 = scalar_lea.sflag [#allocation10], %s611_s7  ;;  %s657_s26 = int_to_ptr.vmem [resolvable:$true] %s1515_s26 }
 0x101   : > { %v582_v25 = vmul.f32 %v544_v29, %v544_v29  ;;  %s1149_s17 = sshra.s32 %s646_s30, 4  ;;  %s1155_s3 = scalar_lea.hbm %s1574_s5, 2  ;;  %s1150_s17 = int_to_ptr.hbm [resolvable:$true] %s1149_s17 }
 0x102   : > { %v593_v5 = vadd.f32 %v592_v20, %v578_v19  ;;  %v556_v23 = vadd.f32 %v555_v18, %v541_v16  ;;  %v583_v38 = vmul.f32 %v545_v33, %v545_v33  ;;  %s1151_s27 = scalar_lea.hbm %s1150_s17, 1  ;;  %p1156_p2 = scmp.lt.s32.totalorder %s1150_s17, %s1574_s5 }
 0x103   : > { %p1152_p9 = scmp.ne.s32.totalorder %s1150_s17, %s1151_s27  ;;  %p1157_p3 = scmp.lt.s32.totalorder %s1155_s3, %s1151_s27 }
 0x104   : > { %v557_v12 = vadd.f32 %v556_v23, %v542_v17  ;;  %v594_v28 = vadd.f32 %v593_v5, %v579_v24 }
 0x105   : > { %p1153_p10 = pnand %p1152_p9, %p1336_p11  ;;  %p1158_p4 = por %p1157_p3, %p1156_p2 }
 0x106   : > { %v595_v31 = vadd.f32 %v594_v28, %v580_v27  ;;  %v558_v32 = vadd.f32 %v557_v12, %v543_v22 }
 0x107   : > { %p1154_p1 = pneg %p1153_p10 }
 0x108   : > { %v559_v34 = vadd.f32 %v558_v32, %v544_v29  ;;  %v596_v35 = vadd.f32 %v595_v31, %v581_v30 }
 0x109   : > { %p1159_p6 = pnand %p1158_p4, %p1154_p1 }
 0x10a   : > { %v597_v36 = vadd.f32 %v596_v35, %v582_v25  ;;  %v560_v37 = vadd.f32 %v559_v34, %v545_v33 }
 0x10c   : > { %v561_v39 = vrot.slane %v560_v37, 4  ;;  %v598_v40 = vadd.f32 %v597_v36, %v583_v38 }
 0x10e   : > { %v562_v41 = vadd.f32 %v561_v39, %v560_v37  ;;  %v599_v42 = vrot.slane %v598_v40, 4 }
 0x110   : > { %v563_v43 = vrot.slane %v562_v41, 2  ;;  %v600_v44 = vadd.f32 %v599_v42, %v598_v40 }
 0x112   : > { %v564_v45 = vadd.f32 %v563_v43, %v562_v41  ;;  %v601_v46 = vrot.slane %v600_v44, 2 }
 0x114   : > { %v565_v47 = vrot.slane %v564_v45, 1  ;;  %v602_v48 = vadd.f32 %v601_v46, %v600_v44 }
 0x116   : > { %v566_v49 = vadd.f32 %v565_v47, %v564_v45  ;;  %v603_v50 = vrot.slane %v602_v48, 1 }
 0x118   : > { %v604_v51 = vadd.f32 %v603_v50, %v602_v48  ;;  %567 = vst [vmem:[%s312_s29] sm:$0x1] %v566_v49 }
 0x119   : > { %1162 = shalt.err (!%p1159_p6)
}
 0x11a   : > { %943 = dma.vmem_to_hbm [thread:$0]  (%p1336_p11), %s644_s13, 16, %s646_s30, %s612_s25   ;;  %605 = vst [vmem:[%s318_s1] sm:$0x1] %v604_v51 }
 0x11b   : > { %s1177_s20 = sshra.s32 %s659_s12, 4  ;;  %s1183_s28 = scalar_lea.hbm %s1575_s6, 2  ;;  %s1178_s20 = int_to_ptr.hbm [resolvable:$true] %s1177_s20 }
 0x11c   : > { %s1179_s14 = scalar_lea.hbm %s1178_s20, 1  ;;  %p1184_p5 = scmp.lt.s32.totalorder %s1178_s20, %s1575_s6 }
 0x11d   : > { %p1180_p13 = scmp.ne.s32.totalorder %s1178_s20, %s1179_s14  ;;  %p1185_p8 = scmp.lt.s32.totalorder %s1183_s28, %s1179_s14 }
 0x11f   : > { %p1181_p0 = pnand %p1180_p13, %p1336_p11  ;;  %p1186_p9 = por %p1185_p8, %p1184_p5 }
 0x121   : > { %p1182_p7 = pneg %p1181_p0 }
 0x123   : > { %p1187_p10 = pnand %p1186_p9, %p1182_p7 }
 0x125   : > { %1190 = shalt.err (!%p1187_p10)
}
 0x126   : > { %944 = dma.vmem_to_hbm [thread:$0]  (%p1336_p11), %s657_s26, 16, %s659_s12, %s612_s25  }
 0x127 PF: > { %s670_s13 = sand.u32 1, %s1225_s21   ;;  %p1591_p1 = scmp.ge.s32.totalorder %s1237_s24, 2 }
 0x128   : > { %s671_s30 = scalar_lea.sflag [#allocation4], %s670_s13 }
 0x129   : > { %p960_p2 = pnand %p1591_p1, %p1340_p12 }
 0x12b   : > { %p961_p3 = pneg %p960_p2 }
 0x12d   : > { %1216 = dma.done.wait (%p961_p3), %s671_s30, 1024  }
 0x12e   : > { %1218 = vsyncadd (%p961_p3), %s671_s30, 4294966272  ;;  %s1592_s1 = sadd.s32 4294967294, %s1237_s24  }
 0x12f   : > { %s680_s9 = sand.u32 1, %s1592_s1  }
 0x130   : > { %s681_s17 = scalar_lea.sflag [#allocation10], %s680_s9 }
 0x131   : > { %1220 = dma.done.wait (%p961_p3), %s681_s17, 32  }
 0x132   : > { %1222 = vsyncadd (%p961_p3), %s681_s17, 4294967264  ;;  %s1593_s24 = sld [smem:[#allocation16_spill]]  ;;  %s1595_s21 = smov %s1229_s22 }
 0x133   : > { %s1594_s26 = sld [smem:[#allocation17_spill]]  ;;  %s1596_s22 = smov %s1233_s23 }
 0x138   : > { %p24_p11 = scmp.ge.s32.totalorder %s1593_s24, 4  }
 0x139   : > { %s1597_s23 = smov %s1594_s26 }
 0x13a   :  { %26 = sbr.rel (!%p24_p11) target bundleno = 11 (0xb), region = 121 }
 0x13f   :  { %695 = vsyncpa [#allocation3], 1 }
 0x140   :  { %697 = vsyncpa [#allocation3 + $0x1], 1 }
 0x141   :  { %698 = vsyncpa [#allocation6], 1 }
 0x142   :  { %699 = vsyncpa [#allocation4], 1 }
 0x143   :  { %701 = vsyncpa [#allocation4 + $0x1], 1 }
 0x144   :  { %702 = vsyncpa [#allocation10], 1 }
 0x145   :  { %704 = vsyncpa [#allocation10 + $0x1], 1 }

</bundles_post_ra>
